<compile_context>
chip_gen: v7x
topology: tpu7x:2x2x1
jax: 0.10.0
libtpu: 0.0.40
codegen_flags: <defaults>
</compile_context>

<pallas_src>
import functools

import jax
import jax.numpy as jnp
from jax.experimental import pallas as pl
from jax.experimental.pallas import tpu as pltpu


def _actor_kernel(x_ref, w1_ref, b1_ref, w2_ref, b2_ref, out_ref, *, compute_dtype):
    x = x_ref[...]
    if compute_dtype is not None:
        # Cast after the pipelined load: x stays f32 in HBM (no extra wrapper
        # pass) while both dots run on the native low-precision MXU path.
        x = x.astype(compute_dtype)

    # ---- hidden = ReLU(x @ W1 + b1), f32 accumulation ----
    h = jnp.dot(x, w1_ref[...], preferred_element_type=jnp.float32)
    h = h + b1_ref[...]                       # (B, H) + (1, H) broadcast, f32
    h = jnp.maximum(h, 0.0)
    h = h.astype(w2_ref.dtype)                # keep second dot on the native MXU path

    # ---- logits = h @ W2 + b2, f32 accumulation ----
    logits = jnp.dot(h, w2_ref[...], preferred_element_type=jnp.float32)
    logits = logits + b2_ref[...]             # (B, O) + (1, O) broadcast, f32

    # ---- numerically stable softmax over last dim (exact division so rows
    # sum to 1 within f32 rounding) ----
    m = jnp.max(logits, axis=-1, keepdims=True)
    e = jnp.exp(logits - m)
    s = jnp.sum(e, axis=-1, keepdims=True)
    out_ref[...] = (e / s).astype(out_ref.dtype)


def actor_forward(x, w1, b1, w2, b2, *, block_b=2048, compute_dtype=None):
    """softmax(relu(x @ w1 + b1) @ w2 + b2, axis=-1).

    x : (B, input_dim) float32
    w1: (input_dim, hidden_dim), b1: (1, hidden_dim)
    w2: (hidden_dim, output_dim), b2: (1, output_dim)
    Returns (B, output_dim) float32 probabilities.

    compute_dtype: optionally run the MXU dots in e.g. bfloat16 (v6e/v7x);
    x is cast *inside* the kernel, biases / accumulation / softmax stay float32.
    Leave None on v5e (no bf16 VPU/EUP; casts would be pure overhead).
    """
    if compute_dtype is not None:
        # Weights are tiny — wrapper-side cast costs nothing.
        w1 = w1.astype(compute_dtype)
        w2 = w2.astype(compute_dtype)
    b1 = b1.astype(jnp.float32)
    b2 = b2.astype(jnp.float32)

    B, D = x.shape
    H = w1.shape[1]
    O = w2.shape[1]
    kernel = functools.partial(_actor_kernel, compute_dtype=compute_dtype)

    if B <= block_b:
        # Single-shot path: whole problem fits trivially in VMEM; no grid, no
        # software-pipeline prologue/epilogue. At B=2 this is launch-latency
        # bound — batch calls / keep it fused in a bigger jit region to go faster.
        return pl.pallas_call(
            kernel,
            out_shape=jax.ShapeDtypeStruct((B, O), jnp.float32),
            in_specs=[pl.BlockSpec(memory_space=pltpu.MemorySpace.VMEM)] * 5,
            out_specs=pl.BlockSpec(memory_space=pltpu.MemorySpace.VMEM),
        )(x, w1, b1, w2, b2)

    # Tiled-batch path: grid over the batch axis only; weights/biases stay
    # VMEM-resident via constant index_maps, x/out blocks stream through the
    # auto-pipeline. No padding / slicing: the partial last block's OOB output
    # rows are dropped by Pallas, and rows are independent.
    nb = pl.cdiv(B, block_b)   # on v7x prefer block_b giving an even nb >= 2
    return pl.pallas_call(
        kernel,
        out_shape=jax.ShapeDtypeStruct((B, O), jnp.float32),
        grid=(nb,),
        in_specs=[
            # (block_b, D): block_b multiple of 8 (f32 sublane), D is full extent.
            pl.BlockSpec((block_b, D), lambda i: (i, 0)),
            pl.BlockSpec((D, H), lambda i: (0, 0)),   # W1 resident across the grid
            pl.BlockSpec((1, H), lambda i: (0, 0)),   # b1 resident
            pl.BlockSpec((H, O), lambda i: (0, 0)),   # W2 resident
            pl.BlockSpec((1, O), lambda i: (0, 0)),   # b2 resident
        ],
        out_specs=pl.BlockSpec((block_b, O), lambda i: (i, 0)),
        compiler_params=pltpu.CompilerParams(
            dimension_semantics=("parallel",),        # batch tiles are independent
        ),
    )(x, w1, b1, w2, b2)


def init_params(key, input_dim, hidden_dim, output_dim):
    # Deterministic init mimicking nn.Linear: U(-1/sqrt(fan_in), 1/sqrt(fan_in)).
    k1, k2, k3, k4 = jax.random.split(key, 4)
    lim1 = 1.0 / jnp.sqrt(jnp.float32(input_dim))
    lim2 = 1.0 / jnp.sqrt(jnp.float32(hidden_dim))
    w1 = jax.random.uniform(k1, (input_dim, hidden_dim), jnp.float32, -lim1, lim1)
    b1 = jax.random.uniform(k2, (1, hidden_dim), jnp.float32, -lim1, lim1)
    w2 = jax.random.uniform(k3, (hidden_dim, output_dim), jnp.float32, -lim2, lim2)
    b2 = jax.random.uniform(k4, (1, output_dim), jnp.float32, -lim2, lim2)
    return w1, b1, w2, b2


def _ref_forward(x, w1, b1, w2, b2, dtype=jnp.float32):
    """Plain-JAX reference matching the kernel's dtype strategy."""
    xb, w1b, w2b = x.astype(dtype), w1.astype(dtype), w2.astype(dtype)
    h = jnp.dot(xb, w1b, preferred_element_type=jnp.float32) + b1
    h = jnp.maximum(h, 0.0).astype(dtype)
    logits = jnp.dot(h, w2b, preferred_element_type=jnp.float32) + b2
    return jax.nn.softmax(logits, axis=-1)


if __name__ == "__main__":
    input_dim, hidden_dim, output_dim = 16, 32, 8

    key = jax.random.PRNGKey(0)
    kx, kp, kx2, kx3 = jax.random.split(key, 4)
    w1, b1, w2, b2 = init_params(kp, input_dim, hidden_dim, output_dim)

    # 1) Small batch (matches the nn.Module usage): no-grid VMEM path.
    x_small = jax.random.normal(kx, (2, input_dim), jnp.float32)
    p_small = jax.block_until_ready(actor_forward(x_small, w1, b1, w2, b2))
    ref_small = _ref_forward(x_small, w1, b1, w2, b2)
    assert p_small.shape == (2, output_dim)
    assert jnp.allclose(p_small, ref_small, atol=2e-3, rtol=2e-3)
    assert jnp.allclose(jnp.sum(p_small, axis=-1), 1.0, atol=1e-4)

    # 2) Ragged batch: tiled path, partial last block handled by Pallas
    #    (no wrapper-side pad / slice).
    x_big = jax.random.normal(kx2, (509, input_dim), jnp.float32)
    p_big = jax.block_until_ready(
        actor_forward(x_big, w1, b1, w2, b2, block_b=256))
    ref_big = _ref_forward(x_big, w1, b1, w2, b2)
    assert p_big.shape == (509, output_dim)
    assert jnp.allclose(p_big, ref_big, atol=2e-3, rtol=2e-3)
    assert jnp.allclose(jnp.sum(p_big, axis=-1), 1.0, atol=1e-4)

    # 3) Rollout-sized batch: big tiles (even count -> v7x 2-TC friendly),
    #    bf16 MXU path with in-kernel cast, f32 accumulation + softmax.
    x_roll = jax.random.normal(kx3, (4096, input_dim), jnp.float32)
    p_roll = jax.block_until_ready(
        actor_forward(x_roll, w1, b1, w2, b2, block_b=2048,
                      compute_dtype=jnp.bfloat16))
    ref_roll = _ref_forward(x_roll, w1, b1, w2, b2, dtype=jnp.bfloat16)
    assert p_roll.shape == (4096, output_dim)
    assert jnp.allclose(p_roll, ref_roll, atol=2e-2, rtol=2e-2)
    assert jnp.allclose(jnp.sum(p_roll, axis=-1), 1.0, atol=1e-4)

    print("KERNEL_OK")
</pallas_src>

<mosaic_0001>
module attributes {stable_mosaic.version = 11 : i64} {
  func.func @_actor_kernel(%arg0: memref<2x16xf32, #tpu.memory_space<vmem>>, %arg1: memref<16x32xf32, #tpu.memory_space<vmem>>, %arg2: memref<1x32xf32, #tpu.memory_space<vmem>>, %arg3: memref<32x8xf32, #tpu.memory_space<vmem>>, %arg4: memref<1x8xf32, #tpu.memory_space<vmem>>, %arg5: memref<2x8xf32, #tpu.memory_space<vmem>>) attributes {dimension_semantics = [], scalar_prefetch = 0 : i64, scratch_operands = 0 : i64, tpu.core_type = #tpu.core_type<tc>} {
    %c0 = arith.constant 0 : index
    %c0_0 = arith.constant 0 : index
    %0 = vector.load %arg0[%c0, %c0_0] : memref<2x16xf32, #tpu.memory_space<vmem>>, vector<2x16xf32>
    %c0_1 = arith.constant 0 : index
    %c0_2 = arith.constant 0 : index
    %1 = vector.load %arg1[%c0_1, %c0_2] : memref<16x32xf32, #tpu.memory_space<vmem>>, vector<16x32xf32>
    %cst = arith.constant dense<0.000000e+00> : vector<2x32xf32>
    %2 = tpu.matmul %0, %1, %cst {dimension_numbers = #tpu.dot_dimension_numbers<[1], [0], [0], [1], [0, 0, 1, 1], [], []>} : vector<2x16xf32>, vector<16x32xf32>, vector<2x32xf32> -> vector<2x32xf32>
    %c0_3 = arith.constant 0 : index
    %c0_4 = arith.constant 0 : index
    %3 = vector.load %arg2[%c0_3, %c0_4] : memref<1x32xf32, #tpu.memory_space<vmem>>, vector<1x32xf32>
    %4 = vector.broadcast %3 : vector<1x32xf32> to vector<2x32xf32>
    %5 = arith.addf %2, %4 : vector<2x32xf32>
    %cst_5 = arith.constant 0.000000e+00 : f32
    %6 = vector.broadcast %cst_5 : f32 to vector<2x32xf32>
    %7 = arith.maximumf %5, %6 : vector<2x32xf32>
    %c0_6 = arith.constant 0 : index
    %c0_7 = arith.constant 0 : index
    %8 = vector.load %arg3[%c0_6, %c0_7] : memref<32x8xf32, #tpu.memory_space<vmem>>, vector<32x8xf32>
    %cst_8 = arith.constant dense<0.000000e+00> : vector<2x8xf32>
    %9 = tpu.matmul %7, %8, %cst_8 {dimension_numbers = #tpu.dot_dimension_numbers<[1], [0], [0], [1], [0, 0, 1, 1], [], []>} : vector<2x32xf32>, vector<32x8xf32>, vector<2x8xf32> -> vector<2x8xf32>
    %c0_9 = arith.constant 0 : index
    %c0_10 = arith.constant 0 : index
    %10 = vector.load %arg4[%c0_9, %c0_10] : memref<1x8xf32, #tpu.memory_space<vmem>>, vector<1x8xf32>
    %11 = vector.broadcast %10 : vector<1x8xf32> to vector<2x8xf32>
    %12 = arith.addf %9, %11 : vector<2x8xf32>
    %cst_11 = arith.constant dense<0xFF800000> : vector<2xf32>
    %13 = vector.multi_reduction <maximumf>, %12, %cst_11 [1] : vector<2x8xf32> to vector<2xf32>
    %14 = vector.shape_cast %13 : vector<2xf32> to vector<2x1xf32>
    %15 = vector.broadcast %14 : vector<2x1xf32> to vector<2x8xf32>
    %16 = arith.subf %12, %15 : vector<2x8xf32>
    %17 = math.exp %16 : vector<2x8xf32>
    %cst_12 = arith.constant dense<0.000000e+00> : vector<2xf32>
    %18 = vector.multi_reduction <add>, %17, %cst_12 [1] : vector<2x8xf32> to vector<2xf32>
    %19 = vector.shape_cast %18 : vector<2xf32> to vector<2x1xf32>
    %20 = vector.broadcast %19 : vector<2x1xf32> to vector<2x8xf32>
    %21 = arith.divf %17, %20 : vector<2x8xf32>
    %c0_13 = arith.constant 0 : index
    %c0_14 = arith.constant 0 : index
    %22 = vector.load %arg5[%c0_13, %c0_14] : memref<2x8xf32, #tpu.memory_space<vmem>>, vector<2x8xf32>
    tpu.vector_store %arg5[%c0_13, %c0_14], %21 {strides = array<i32>} : memref<2x8xf32, #tpu.memory_space<vmem>>, vector<2x8xf32>,
    return
  }
}

</mosaic_0001>

<bundles_post_ra>
// kernel: tpu_custom_call.1
= control target key start
LH: loop header
LB: loop body
LE: loop exit
PB: predicated region body
PF: predicated region fallthrough
CT: control target
= control target key end

     0   :  { %v289_v2 = vmov 0.0|0.0   ;;  %vm290_vm0 = vmmov 0   ;;  %v291_v4 = vmov 0.0   ;;  %s365_s0 = inlined_call_operand.vmem [shape: f32[2,16], index: 0, kind: input, shape index: {}]   ;;  %s366_s1 = inlined_call_operand.vmem [shape: f32[16,32], index: 1, kind: input, shape index: {}]   ;;  %s367_s2 = inlined_call_operand.vmem [shape: f32[1,32], index: 2, kind: input, shape index: {}]   ;;  %s368_s3 = inlined_call_operand.vmem [shape: f32[32,8], index: 3, kind: input, shape index: {}]   ;;  %s369_s4 = inlined_call_operand.vmem [shape: f32[1,8], index: 4, kind: input, shape index: {}]   ;;  %s370_s5 = inlined_call_operand.hbm [shape: f32[2,8], index: 5, kind: output, shape index: {}]  }
   0x1   :  { %v22_v0 = vld [vmem:[%s366_s1] sm:$0xff]  ;;  %v23_v1 = vld [vmem:[%s366_s1 + $0x8] sm:$0xff]  ;;  %248 = vmatprep.subr.bf16.mxu0 %v289_v2  ;;  %234 = vmatprep.mubr.msk.f32.mxu0 %vm290_vm0, %v291_v4 }
   0x2   :  { %v249_v3 = vpack.c.bf16 %v23_v1, %v22_v0  ;;  %v106_v5 = vld [vmem:[%s368_s3] sm:$0xff]  ;;  %v107_v6 = vld [vmem:[%s368_s3 + $0x8] sm:$0xff]  ;;  %251 = vmatprep.subr.bf16.mxu1 %v289_v2  ;;  %245 = vmatprep.mubr.msk.f32.mxu1 %vm290_vm0, %v291_v4 }
   0x3   :  { %v252_v7 = vpack.c.bf16 %v107_v6, %v106_v5 }
   0x4   :  { %10 = vsyncpa [#allocation3], 0  ;;  %250 = vmatpush3.bf16.msra.mxu0 %v249_v3  ;;  %v21_v8 = vld [vmem:[%s365_s0] sm:$0x3]  ;;  %vm31_vm1 = vcmask 130048   ;;  %v108_v9 = vld [vmem:[%s368_s3 + $0x10] sm:$0xff] }
   0x5   :  { %253 = vmatpush3.bf16.msra.mxu1 %v252_v7  ;;  %v109_v10 = vld [vmem:[%s368_s3 + $0x18] sm:$0xff]  ;;  %v218_v12 = vld [vmem:[%s367_s2] ss:$0 sm:$0xff]  ;;  %vm117_vm2 = vcmask 261120   ;;  %vm191_vm3 = vcmask 58368   ;;  %s292_s2 = smov [#allocation2]  }
   0x6   :  { %254 = vmatprep.subr.bf16.mxu1 %v289_v2  ;;  %v255_v11 = vpack.c.bf16 %v109_v10, %v108_v9  ;;  %v220_v17 = vld [vmem:[%s369_s4] ss:$0 sm:$0xff]  ;;  %s210_s3 = sshll.u32 %s292_s2, 4  ;;  %s211_s3 = int_to_ptr.vmem [resolvable:$true] %s210_s3 }
   0x7   :  { %235 = vmatmul.mubr.msk.f32.vlgmr.msra.gmra.mrb[0].mxu0 %vm31_vm1, %v21_v8  ;;  %s265_s4 = scalar_lea.vmem %s211_s3, 32  ;;  %p270_p1 = scmp.lt.s32.totalorder %s211_s3, %s211_s3 }
   0x8   :  { %p266_p0 = scmp.ne.s32.totalorder %s211_s3, %s265_s4  ;;  %p271_p2 = scmp.lt.s32.totalorder %s265_s4, %s265_s4 }
   0x9   :  { %256 = vmatpush3.bf16.msra.mxu1 %v255_v11 }
   0xa   :  { %p272_p3 = por %p271_p2, %p270_p1 }
   0xc   :  { %p273_p4 = pnand %p272_p3, %p266_p0 }
  0xda   :  { %v101_v13 = vpop.f32.mrb[0].mxu0 }
  0xdb   :  { %v102_v14 = vadd.f32 %v218_v12, %v101_v13  ;;  %v236_v15 = vpop.f32.mrb[1].mxu0 }
  0xdd   :  { %v105_v16 = vmax.f32 %v102_v14, 0.0 }
  0xdf   :  { %246 = vmatmul.mubr.msk.f32.vlgmr.msra.gmra.mrb[0].mxu1 %vm117_vm2, %v105_v16 }
 0x1b2   :  { %v187_v18 = vpop.f32.mrb[0].mxu1 }
 0x1b3   :  { %v188_v19 = vadd.f32 %v220_v17, %v187_v18  ;;  %v247_v20 = vpop.f32.mrb[1].mxu1 }
 0x1b5   :  { %v192_v21 = vsel %vm191_vm3, %v188_v19, -inf }
 0x1b6   :  { %193 = vmax.xlane.f32.xlu0 %v192_v21 }
 0x243   :  { %v194_v22 = vpop.xlane.xlu0 %193 }
 0x244   :  { %v195_v23 = vsub.f32 %v188_v19, %v194_v22 }
 0x246   :  { %v196_v24 = vmul.f32 1.442695, %v195_v23 }
 0x248   :  { %261 = vpow2.f32 %v196_v24 }
 0x252   :  { %v262_v25 = vpop.eup %261 }
 0x253   :  { %v198_v26 = vsel %vm191_vm3, %v262_v25, 0.0 }
 0x254   :  { %199 = vadd.xlane.f32.xlu0 %v198_v26 }
 0x2e1   :  { %v200_v27 = vpop.xlane.xlu0 %199 }
 0x2e2   :  { %263 = vrcp.f32 %v200_v27 }
 0x2ec   :  { %v264_v28 = vpop.eup %263 }
 0x2ed   :  { %v202_v29 = vmul.f32 %v264_v28, %v262_v25 }
 0x2ef   :  { %203 = vst.msk [vmem:[#allocation2] sm:$0x3] %vm191_vm3, %v202_v29 }
 0x2f0   :  { %276 = shalt.err (!%p273_p4)
}
 0x2f1   :  { %s277_s11 = scalar_lea.hbm %s370_s5, 32 }
 0x2f2   :  { %p278_p5 = scmp.ne.s32.totalorder %s370_s5, %s277_s11  ;;  %p281_p6 = scmp.lt.u32.totalorder %s277_s11, %s370_s5 }
 0x2f4   :  { %p283_p7 = pnand %p281_p6, %p278_p5 }
 0x2f6   :  { %286 = shalt.err (!%p283_p7)
}
 0x2f7   :  { %213 = dma.vmem_to_hbm [thread:$0]  %s211_s3, 32, %s370_s5, [#allocation3]  }
 0x2f8   :  { %287 = dma.done.wait [#allocation3], 32  }
 0x2f9   :  { %288 = vsyncadd [#allocation3], 4294967264 }
 0x2fa   :  { %217 = vsyncpa [#allocation3], 1 }

</bundles_post_ra>
